<compile_context>
chip_gen: v6e
topology: v6e:2x2x1
jax: 0.10.0
libtpu: 0.0.40
codegen_flags: <defaults>
</compile_context>

<pallas_src>
import jax
import jax.numpy as jnp
from jax.experimental import pallas as pl
from jax.experimental.pallas import tpu as pltpu


def _round_up(v, m):
    return ((v + m - 1) // m) * m


def _cdiv(a, b):
    return -(-a // b)


_NEG_BIG = -1e30  # "minus infinity" that avoids inf arithmetic edge cases


def _tpu_defaults():
    """(vmem_limit_bytes, default tile_m, min grid steps) per TPU generation."""
    try:
        kind = jax.devices()[0].device_kind.lower()
    except Exception:
        kind = ""
    if "v7" in kind:
        # 64 MiB VMEM per TC, 2 TCs: modest limit, guarantee >=2 steps per core.
        return 48 * 1024 * 1024, 256, 4
    if "v6" in kind:
        # 128 MiB VMEM, 256x256 MXU: big batch tiles amortize per-step overhead.
        return 96 * 1024 * 1024, 512, 2
    if "v5" in kind:
        # 128 MiB VMEM, 128-wide MXU: tile_m=512 keeps M a multiple of 128.
        return 96 * 1024 * 1024, 512, 2
    return 48 * 1024 * 1024, 256, 2  # conservative fallback


def _make_mlp_kernel(num_layers):
    """Kernel argument order: x_ref, (w_ref, b_ref) * num_layers, out_ref."""

    def kernel(*refs):
        x_ref = refs[0]
        out_ref = refs[-1]
        x = x_ref[...]  # bf16 activations straight off the DMA
        for li in range(num_layers):
            w = refs[1 + 2 * li][...]   # bf16 (Fin_pad, Fout_pad), BN pre-folded
            b = refs[2 + 2 * li][...]   # f32  (1, Fout_pad)
            # bf16-fed MXU, f32 accumulate; bias/ReLU stay f32 (v5e VPU has no bf16).
            x = jnp.dot(x, w, preferred_element_type=jnp.float32) + b
            if li < num_layers - 1:
                # ReLU (dropout is identity in eval) fused with the downcast
                # that feeds the next MXU pass.
                x = jnp.maximum(x, 0.0).astype(jnp.bfloat16)
        # log_softmax over the logits; padded logit columns already carry a
        # -1e30 bias (zero W columns), so exp() underflows to exactly 0 and no
        # in-kernel mask is needed.
        m = jnp.max(x, axis=-1, keepdims=True)
        s = x - m
        lse = jnp.log(jnp.sum(jnp.exp(s), axis=-1, keepdims=True))
        out_ref[...] = (s - lse).astype(out_ref.dtype)

    return kernel


def _fold_and_pad_params(params):
    """Fold eval-mode BN into (W, b), pad feature dims, cast W to bf16.

    * First-layer fan_in padded only to a sublane multiple when < 128 (x is the
      only per-step DMA; padding 16->128 would inflate it 8x with zeros).
    * Hidden fan_in / all fan_out padded to 128 -> lane-dense MXU tiles.
    * Last-layer padded bias columns set to -1e30 -> free logit masking.
    """
    num_layers = len(params)
    folded = []
    for li, p in enumerate(params):
        w = p["w"].astype(jnp.float32)      # (fan_in, fan_out), pre-transposed
        b = p["b"].astype(jnp.float32)      # (1, fan_out)
        if "bn_scale" in p:
            w = w * p["bn_scale"]           # per-output-column scale
            b = b * p["bn_scale"] + p["bn_shift"]
        fi, fo = w.shape
        if li == 0 and fi < 128:
            fi_p = _round_up(max(fi, 8), 8)
        else:
            fi_p = _round_up(fi, 128)
        fo_p = _round_up(fo, 128)
        w = jnp.pad(w, ((0, fi_p - fi), (0, fo_p - fo)))
        pad_val = _NEG_BIG if li == num_layers - 1 else 0.0
        b = jnp.pad(b, ((0, 0), (0, fo_p - fo)), constant_values=pad_val)
        folded.append((w.astype(jnp.bfloat16), b))
    return folded


def mlp_forward(x, params, *, tile_m=None):
    """x: (N, in_channels) f32. params: list of per-layer dicts (see init)."""
    N, f_in = x.shape
    out_channels = params[-1]["w"].shape[1]

    vmem_limit, default_tm, min_steps = _tpu_defaults()
    if tile_m is None:
        tile_m = default_tm

    folded = _fold_and_pad_params(params)
    num_layers = len(folded)
    f_in_pad = folded[0][0].shape[0]
    f_out_pad = folded[-1][0].shape[1]

    # --- Batch tiling -------------------------------------------------------
    n8 = _round_up(max(N, 8), 8)
    tm = max(8, (min(int(tile_m), n8) // 8) * 8)
    # Keep >= min_steps grid steps so the "parallel" axis (megacore on v7x) and
    # the x/out double-buffer pipeline actually have work to overlap.
    if _cdiv(n8, tm) < min_steps:
        tm = max(8, _round_up(_cdiv(n8, min_steps), 8))

    # --- VMEM budget check (resident weights are single-buffered) -----------
    weight_bytes = sum(w.size * 2 + b.size * 4 for w, b in folded)
    max_hidden = max(w.shape[1] for w, _ in folded)

    def _tile_vmem(tm_):
        return (2 * tm_ * f_in_pad * 2          # x tile (bf16, double-buffered)
                + 2 * tm_ * f_out_pad * 4       # out tile (f32, double-buffered)
                + 2 * tm_ * max_hidden * 4)     # f32 inter-layer intermediates

    budget = int(0.75 * vmem_limit)
    while tm > 8 and weight_bytes + _tile_vmem(tm) > budget:
        tm = max(8, ((tm // 2) // 8) * 8)
    # TODO(synk): if weight_bytes alone exceeds the budget (very large hidden
    # dims), the all-resident-weight design needs a K/layer-tiled streaming
    # fallback (emit_pipeline over K) instead of shrinking tile_m.

    n_pad = _round_up(n8, tm)

    # x streamed in bf16 (the kernel computes the matmul in bf16 anyway):
    # halves the per-step HBM->VMEM bytes and the x double-buffer VMEM.
    x_pad = jnp.pad(x.astype(jnp.float32),
                    ((0, n_pad - N), (0, f_in_pad - f_in))).astype(jnp.bfloat16)

    inputs = [x_pad]
    for w, b in folded:
        inputs += [w, b]

    flops = 2 * n_pad * sum(w.shape[0] * w.shape[1] for w, _ in folded)
    bytes_accessed = (x_pad.size * 2
                      + sum(w.size * 2 + b.size * 4 for w, b in folded)
                      + n_pad * f_out_pad * 4)
    cost = pl.CostEstimate(flops=flops,
                           transcendentals=n_pad * (f_out_pad + 1),
                           bytes_accessed=bytes_accessed)

    kernel = _make_mlp_kernel(num_layers)
    out_shape = jax.ShapeDtypeStruct((n_pad, f_out_pad), jnp.float32)
    out_spec = pl.BlockSpec((tm, f_out_pad), lambda i: (i, 0))
    compiler_params = pltpu.CompilerParams(
        dimension_semantics=("parallel",),     # shard batch tiles across TCs
        vmem_limit_bytes=vmem_limit,
    )

    def _run(single_buffer_weights):
        in_specs = [pl.BlockSpec((tm, f_in_pad), lambda i: (i, 0))]
        for w, b in folded:
            if single_buffer_weights:
                # Constant block index -> weights stay VMEM-resident across
                # grid steps; single-buffering halves their VMEM footprint
                # (they are never re-fetched, so double-buffering buys nothing).
                in_specs.append(pl.BlockSpec(w.shape, lambda i: (0, 0),
                                             pipeline_mode=pl.Buffered(1)))
                in_specs.append(pl.BlockSpec(b.shape, lambda i: (0, 0),
                                             pipeline_mode=pl.Buffered(1)))
            else:
                in_specs.append(pl.BlockSpec(w.shape, lambda i: (0, 0)))
                in_specs.append(pl.BlockSpec(b.shape, lambda i: (0, 0)))
        return pl.pallas_call(
            kernel,
            out_shape=out_shape,
            grid=(n_pad // tm,),
            in_specs=in_specs,
            out_specs=out_spec,
            compiler_params=compiler_params,
            cost_estimate=cost,
        )(*inputs)

    try:
        out = _run(True)
    except Exception:
        # Fallback if this Pallas version rejects Buffered(1) on a top-level
        # pallas_call: identical semantics, default double-buffering.
        out = _run(False)

    # Strip batch padding and padded logit columns.
    return out[:N, :out_channels]


def init_mlp_params(key, in_channels, hidden_channels, out_channels, num_layers,
                    batchnorm=True):
    """Deterministic init mimicking torch.nn.Linear (U[-1/sqrt(fan_in), +]).
    BatchNorm running stats are fresh (mean=0, var=1), gamma=1, beta=0;
    stored as a scale/shift that the wrapper folds into W/b."""
    dims = [in_channels] + [hidden_channels] * (num_layers - 1) + [out_channels]
    eps = 1e-5
    params = []
    for li in range(num_layers):
        fan_in, fan_out = dims[li], dims[li + 1]
        key, kw, kb = jax.random.split(key, 3)
        bound = 1.0 / jnp.sqrt(jnp.float32(fan_in))
        # stored already transposed: (fan_in, fan_out)
        w = jax.random.uniform(kw, (fan_in, fan_out), jnp.float32, -bound, bound)
        b = jax.random.uniform(kb, (1, fan_out), jnp.float32, -bound, bound)
        layer = {"w": w, "b": b}
        if li < num_layers - 1 and batchnorm:
            gamma = jnp.ones((1, fan_out), jnp.float32)
            beta = jnp.zeros((1, fan_out), jnp.float32)
            running_mean = jnp.zeros((1, fan_out), jnp.float32)
            running_var = jnp.ones((1, fan_out), jnp.float32)
            scale = gamma / jnp.sqrt(running_var + eps)
            shift = beta - running_mean * scale
            layer["bn_scale"] = scale
            layer["bn_shift"] = shift
        params.append(layer)
    return params


def mlp_reference(x, params):
    """Pure-JAX reference mirroring the kernel's math (BN folded, bf16-fed
    matmuls with f32 accumulation, bf16 inter-layer activations) so the
    comparison is tight."""
    num_layers = len(params)
    h = x.astype(jnp.bfloat16)
    for li, p in enumerate(params):
        w = p["w"].astype(jnp.float32)
        b = p["b"].astype(jnp.float32)
        if "bn_scale" in p:
            w = w * p["bn_scale"]
            b = b * p["bn_scale"] + p["bn_shift"]
        z = jnp.dot(h, w.astype(jnp.bfloat16),
                    preferred_element_type=jnp.float32) + b
        if li < num_layers - 1:
            h = jnp.maximum(z, 0.0).astype(jnp.bfloat16)
        else:
            h = z
    return jax.nn.log_softmax(h, axis=-1)


if __name__ == "__main__":
    # Small shapes consistent with the module's forward: x is (N, in_channels).
    N, in_channels, hidden_channels, out_channels = 8, 16, 32, 8
    num_layers = 3
    dropout = 0.5  # identity in eval mode

    key = jax.random.PRNGKey(0)
    key, kx = jax.random.split(key)
    x = jax.random.normal(kx, (N, in_channels), jnp.float32)

    params = init_mlp_params(key, in_channels, hidden_channels, out_channels,
                             num_layers, batchnorm=True)

    out = jax.block_until_ready(mlp_forward(x, params))
    ref = mlp_reference(x, params)

    assert out.shape == (N, out_channels)
    assert jnp.allclose(out, ref, atol=1e-4, rtol=1e-4), "mismatch vs reference"

    print("KERNEL_OK")
</pallas_src>

<mosaic_0001>
module attributes {stable_mosaic.version = 11 : i64} {
  func.func @kernel(%arg0: i32, %arg1: memref<8x16xbf16, #tpu.memory_space<vmem>>, %arg2: memref<16x128xbf16, #tpu.memory_space<vmem>>, %arg3: memref<1x128xf32, #tpu.memory_space<vmem>>, %arg4: memref<128x128xbf16, #tpu.memory_space<vmem>>, %arg5: memref<1x128xf32, #tpu.memory_space<vmem>>, %arg6: memref<128x128xbf16, #tpu.memory_space<vmem>>, %arg7: memref<1x128xf32, #tpu.memory_space<vmem>>, %arg8: memref<8x128xf32, #tpu.memory_space<vmem>>) attributes {dimension_semantics = [#tpu.dimension_semantics<parallel>], iteration_bounds = array<i64: 1>, scalar_prefetch = 0 : i64, scratch_operands = 0 : i64, tpu.core_type = #tpu.core_type<tc>, window_params = [{transform_indices = @transform_0, window_bounds = array<i64: 8, 16>}, {pipeline_mode = #tpu.pipeline_mode<synchronous>, transform_indices = @transform_1, window_bounds = array<i64: 16, 128>}, {pipeline_mode = #tpu.pipeline_mode<synchronous>, transform_indices = @transform_2, window_bounds = array<i64: 1, 128>}, {pipeline_mode = #tpu.pipeline_mode<synchronous>, transform_indices = @transform_3, window_bounds = array<i64: 128, 128>}, {pipeline_mode = #tpu.pipeline_mode<synchronous>, transform_indices = @transform_4, window_bounds = array<i64: 1, 128>}, {pipeline_mode = #tpu.pipeline_mode<synchronous>, transform_indices = @transform_5, window_bounds = array<i64: 128, 128>}, {pipeline_mode = #tpu.pipeline_mode<synchronous>, transform_indices = @transform_6, window_bounds = array<i64: 1, 128>}, {transform_indices = @transform_7, window_bounds = array<i64: 8, 128>}]} {
    %c0 = arith.constant 0 : index
    %c0_0 = arith.constant 0 : index
    %0 = vector.load %arg1[%c0, %c0_0] : memref<8x16xbf16, #tpu.memory_space<vmem>>, vector<8x16xbf16>
    %c0_1 = arith.constant 0 : index
    %c0_2 = arith.constant 0 : index
    %1 = vector.load %arg2[%c0_1, %c0_2] : memref<16x128xbf16, #tpu.memory_space<vmem>>, vector<16x128xbf16>
    %c0_3 = arith.constant 0 : index
    %c0_4 = arith.constant 0 : index
    %2 = vector.load %arg3[%c0_3, %c0_4] : memref<1x128xf32, #tpu.memory_space<vmem>>, vector<1x128xf32>
    %cst = arith.constant dense<0.000000e+00> : vector<8x128xf32>
    %3 = tpu.matmul %0, %1, %cst {dimension_numbers = #tpu.dot_dimension_numbers<[1], [0], [0], [1], [0, 0, 1, 1], [], []>} : vector<8x16xbf16>, vector<16x128xbf16>, vector<8x128xf32> -> vector<8x128xf32>
    %4 = vector.broadcast %2 : vector<1x128xf32> to vector<8x128xf32>
    %5 = arith.addf %3, %4 : vector<8x128xf32>
    %cst_5 = arith.constant 0.000000e+00 : f32
    %6 = vector.broadcast %cst_5 : f32 to vector<8x128xf32>
    %7 = arith.maximumf %5, %6 : vector<8x128xf32>
    %8 = arith.truncf %7 : vector<8x128xf32> to vector<8x128xbf16>
    %c0_6 = arith.constant 0 : index
    %c0_7 = arith.constant 0 : index
    %9 = vector.load %arg4[%c0_6, %c0_7] : memref<128x128xbf16, #tpu.memory_space<vmem>>, vector<128x128xbf16>
    %c0_8 = arith.constant 0 : index
    %c0_9 = arith.constant 0 : index
    %10 = vector.load %arg5[%c0_8, %c0_9] : memref<1x128xf32, #tpu.memory_space<vmem>>, vector<1x128xf32>
    %cst_10 = arith.constant dense<0.000000e+00> : vector<8x128xf32>
    %11 = tpu.matmul %8, %9, %cst_10 {dimension_numbers = #tpu.dot_dimension_numbers<[1], [0], [0], [1], [0, 0, 1, 1], [], []>} : vector<8x128xbf16>, vector<128x128xbf16>, vector<8x128xf32> -> vector<8x128xf32>
    %12 = vector.broadcast %10 : vector<1x128xf32> to vector<8x128xf32>
    %13 = arith.addf %11, %12 : vector<8x128xf32>
    %cst_11 = arith.constant 0.000000e+00 : f32
    %14 = vector.broadcast %cst_11 : f32 to vector<8x128xf32>
    %15 = arith.maximumf %13, %14 : vector<8x128xf32>
    %16 = arith.truncf %15 : vector<8x128xf32> to vector<8x128xbf16>
    %c0_12 = arith.constant 0 : index
    %c0_13 = arith.constant 0 : index
    %17 = vector.load %arg6[%c0_12, %c0_13] : memref<128x128xbf16, #tpu.memory_space<vmem>>, vector<128x128xbf16>
    %c0_14 = arith.constant 0 : index
    %c0_15 = arith.constant 0 : index
    %18 = vector.load %arg7[%c0_14, %c0_15] : memref<1x128xf32, #tpu.memory_space<vmem>>, vector<1x128xf32>
    %cst_16 = arith.constant dense<0.000000e+00> : vector<8x128xf32>
    %19 = tpu.matmul %16, %17, %cst_16 {dimension_numbers = #tpu.dot_dimension_numbers<[1], [0], [0], [1], [0, 0, 1, 1], [], []>} : vector<8x128xbf16>, vector<128x128xbf16>, vector<8x128xf32> -> vector<8x128xf32>
    %20 = vector.broadcast %18 : vector<1x128xf32> to vector<8x128xf32>
    %21 = arith.addf %19, %20 : vector<8x128xf32>
    %cst_17 = arith.constant dense<0xFF800000> : vector<8xf32>
    %22 = vector.multi_reduction <maximumf>, %21, %cst_17 [1] : vector<8x128xf32> to vector<8xf32>
    %23 = vector.shape_cast %22 : vector<8xf32> to vector<8x1xf32>
    %24 = vector.broadcast %23 : vector<8x1xf32> to vector<8x128xf32>
    %25 = arith.subf %21, %24 : vector<8x128xf32>
    %26 = math.exp %25 : vector<8x128xf32>
    %cst_18 = arith.constant dense<0.000000e+00> : vector<8xf32>
    %27 = vector.multi_reduction <add>, %26, %cst_18 [1] : vector<8x128xf32> to vector<8xf32>
    %28 = vector.shape_cast %27 : vector<8xf32> to vector<8x1xf32>
    %29 = math.log %28 : vector<8x1xf32>
    %30 = vector.broadcast %29 : vector<8x1xf32> to vector<8x128xf32>
    %31 = arith.subf %25, %30 : vector<8x128xf32>
    %c0_19 = arith.constant 0 : index
    %c0_20 = arith.constant 0 : index
    %32 = vector.load %arg8[%c0_19, %c0_20] : memref<8x128xf32, #tpu.memory_space<vmem>>, vector<8x128xf32>
    tpu.vector_store %arg8[%c0_19, %c0_20], %31 {strides = array<i32>} : memref<8x128xf32, #tpu.memory_space<vmem>>, vector<8x128xf32>,
    return
  }
  func.func @transform_0(%arg0: i32) -> (i32, i32) {
    %c0_i32 = arith.constant 0 : i32
    %c0_i32_0 = arith.constant 0 : i32
    return %arg0, %c0_i32 : i32, i32
  }
  func.func @transform_1(%arg0: i32) -> (i32, i32) {
    %c0_i32 = arith.constant 0 : i32
    %c0_i32_0 = arith.constant 0 : i32
    %c0_i32_1 = arith.constant 0 : i32
    return %c0_i32, %c0_i32_0 : i32, i32
  }
  func.func @transform_2(%arg0: i32) -> (i32, i32) {
    %c0_i32 = arith.constant 0 : i32
    %c0_i32_0 = arith.constant 0 : i32
    %c0_i32_1 = arith.constant 0 : i32
    return %c0_i32, %c0_i32_0 : i32, i32
  }
  func.func @transform_3(%arg0: i32) -> (i32, i32) {
    %c0_i32 = arith.constant 0 : i32
    %c0_i32_0 = arith.constant 0 : i32
    %c0_i32_1 = arith.constant 0 : i32
    return %c0_i32, %c0_i32_0 : i32, i32
  }
  func.func @transform_4(%arg0: i32) -> (i32, i32) {
    %c0_i32 = arith.constant 0 : i32
    %c0_i32_0 = arith.constant 0 : i32
    %c0_i32_1 = arith.constant 0 : i32
    return %c0_i32, %c0_i32_0 : i32, i32
  }
  func.func @transform_5(%arg0: i32) -> (i32, i32) {
    %c0_i32 = arith.constant 0 : i32
    %c0_i32_0 = arith.constant 0 : i32
    %c0_i32_1 = arith.constant 0 : i32
    return %c0_i32, %c0_i32_0 : i32, i32
  }
  func.func @transform_6(%arg0: i32) -> (i32, i32) {
    %c0_i32 = arith.constant 0 : i32
    %c0_i32_0 = arith.constant 0 : i32
    %c0_i32_1 = arith.constant 0 : i32
    return %c0_i32, %c0_i32_0 : i32, i32
  }
  func.func @transform_7(%arg0: i32) -> (i32, i32) {
    %c0_i32 = arith.constant 0 : i32
    %c0_i32_0 = arith.constant 0 : i32
    return %arg0, %c0_i32 : i32, i32
  }
}

module attributes {stable_mosaic.version = 11 : i64} {
  func.func @kernel(%arg0: i32, %arg1: memref<8x16xbf16, #tpu.memory_space<vmem>>, %arg2: memref<16x128xbf16, #tpu.memory_space<vmem>>, %arg3: memref<1x128xf32, #tpu.memory_space<vmem>>, %arg4: memref<128x128xbf16, #tpu.memory_space<vmem>>, %arg5: memref<1x128xf32, #tpu.memory_space<vmem>>, %arg6: memref<128x128xbf16, #tpu.memory_space<vmem>>, %arg7: memref<1x128xf32, #tpu.memory_space<vmem>>, %arg8: memref<8x128xf32, #tpu.memory_space<vmem>>) attributes {dimension_semantics = [#tpu.dimension_semantics<parallel>], iteration_bounds = array<i64: 1>, scalar_prefetch = 0 : i64, scratch_operands = 0 : i64, tpu.core_type = #tpu.core_type<tc>, window_params = [{transform_indices = @transform_0, window_bounds = array<i64: 8, 16>}, {pipeline_mode = #tpu.pipeline_mode<synchronous>, transform_indices = @transform_1, window_bounds = array<i64: 16, 128>}, {pipeline_mode = #tpu.pipeline_mode<synchronous>, transform_indices = @transform_2, window_bounds = array<i64: 1, 128>}, {pipeline_mode = #tpu.pipeline_mode<synchronous>, transform_indices = @transform_3, window_bounds = array<i64: 128, 128>}, {pipeline_mode = #tpu.pipeline_mode<synchronous>, transform_indices = @transform_4, window_bounds = array<i64: 1, 128>}, {pipeline_mode = #tpu.pipeline_mode<synchronous>, transform_indices = @transform_5, window_bounds = array<i64: 128, 128>}, {pipeline_mode = #tpu.pipeline_mode<synchronous>, transform_indices = @transform_6, window_bounds = array<i64: 1, 128>}, {transform_indices = @transform_7, window_bounds = array<i64: 8, 128>}]} {
    %c0 = arith.constant 0 : index
    %c0_0 = arith.constant 0 : index
    %0 = vector.load %arg1[%c0, %c0_0] : memref<8x16xbf16, #tpu.memory_space<vmem>>, vector<8x16xbf16>
    %c0_1 = arith.constant 0 : index
    %c0_2 = arith.constant 0 : index
    %1 = vector.load %arg2[%c0_1, %c0_2] : memref<16x128xbf16, #tpu.memory_space<vmem>>, vector<16x128xbf16>
    %c0_3 = arith.constant 0 : index
    %c0_4 = arith.constant 0 : index
    %2 = vector.load %arg3[%c0_3, %c0_4] : memref<1x128xf32, #tpu.memory_space<vmem>>, vector<1x128xf32>
    %cst = arith.constant dense<0.000000e+00> : vector<8x128xf32>
    %3 = tpu.matmul %0, %1, %cst {dimension_numbers = #tpu.dot_dimension_numbers<[1], [0], [0], [1], [0, 0, 1, 1], [], []>} : vector<8x16xbf16>, vector<16x128xbf16>, vector<8x128xf32> -> vector<8x128xf32>
    %4 = vector.broadcast %2 : vector<1x128xf32> to vector<8x128xf32>
    %5 = arith.addf %3, %4 : vector<8x128xf32>
    %cst_5 = arith.constant 0.000000e+00 : f32
    %6 = vector.broadcast %cst_5 : f32 to vector<8x128xf32>
    %7 = arith.maximumf %5, %6 : vector<8x128xf32>
    %8 = arith.truncf %7 : vector<8x128xf32> to vector<8x128xbf16>
    %c0_6 = arith.constant 0 : index
    %c0_7 = arith.constant 0 : index
    %9 = vector.load %arg4[%c0_6, %c0_7] : memref<128x128xbf16, #tpu.memory_space<vmem>>, vector<128x128xbf16>
    %c0_8 = arith.constant 0 : index
    %c0_9 = arith.constant 0 : index
    %10 = vector.load %arg5[%c0_8, %c0_9] : memref<1x128xf32, #tpu.memory_space<vmem>>, vector<1x128xf32>
    %cst_10 = arith.constant dense<0.000000e+00> : vector<8x128xf32>
    %11 = tpu.matmul %8, %9, %cst_10 {dimension_numbers = #tpu.dot_dimension_numbers<[1], [0], [0], [1], [0, 0, 1, 1], [], []>} : vector<8x128xbf16>, vector<128x128xbf16>, vector<8x128xf32> -> vector<8x128xf32>
    %12 = vector.broadcast %10 : vector<1x128xf32> to vector<8x128xf32>
    %13 = arith.addf %11, %12 : vector<8x128xf32>
    %cst_11 = arith.constant 0.000000e+00 : f32
    %14 = vector.broadcast %cst_11 : f32 to vector<8x128xf32>
    %15 = arith.maximumf %13, %14 : vector<8x128xf32>
    %16 = arith.truncf %15 : vector<8x128xf32> to vector<8x128xbf16>
    %c0_12 = arith.constant 0 : index
    %c0_13 = arith.constant 0 : index
    %17 = vector.load %arg6[%c0_12, %c0_13] : memref<128x128xbf16, #tpu.memory_space<vmem>>, vector<128x128xbf16>
    %c0_14 = arith.constant 0 : index
    %c0_15 = arith.constant 0 : index
    %18 = vector.load %arg7[%c0_14, %c0_15] : memref<1x128xf32, #tpu.memory_space<vmem>>, vector<1x128xf32>
    %cst_16 = arith.constant dense<0.000000e+00> : vector<8x128xf32>
    %19 = tpu.matmul %16, %17, %cst_16 {dimension_numbers = #tpu.dot_dimension_numbers<[1], [0], [0], [1], [0, 0, 1, 1], [], []>} : vector<8x128xbf16>, vector<128x128xbf16>, vector<8x128xf32> -> vector<8x128xf32>
    %20 = vector.broadcast %18 : vector<1x128xf32> to vector<8x128xf32>
    %21 = arith.addf %19, %20 : vector<8x128xf32>
    %cst_17 = arith.constant dense<0xFF800000> : vector<8xf32>
    %22 = vector.multi_reduction <maximumf>, %21, %cst_17 [1] : vector<8x128xf32> to vector<8xf32>
    %23 = vector.shape_cast %22 : vector<8xf32> to vector<8x1xf32>
    %24 = vector.broadcast %23 : vector<8x1xf32> to vector<8x128xf32>
    %25 = arith.subf %21, %24 : vector<8x128xf32>
    %26 = math.exp %25 : vector<8x128xf32>
    %cst_18 = arith.constant dense<0.000000e+00> : vector<8xf32>
    %27 = vector.multi_reduction <add>, %26, %cst_18 [1] : vector<8x128xf32> to vector<8xf32>
    %28 = vector.shape_cast %27 : vector<8xf32> to vector<8x1xf32>
    %29 = math.log %28 : vector<8x1xf32>
    %30 = vector.broadcast %29 : vector<8x1xf32> to vector<8x128xf32>
    %31 = arith.subf %25, %30 : vector<8x128xf32>
    %c0_19 = arith.constant 0 : index
    %c0_20 = arith.constant 0 : index
    %32 = vector.load %arg8[%c0_19, %c0_20] : memref<8x128xf32, #tpu.memory_space<vmem>>, vector<8x128xf32>
    tpu.vector_store %arg8[%c0_19, %c0_20], %31 {strides = array<i32>} : memref<8x128xf32, #tpu.memory_space<vmem>>, vector<8x128xf32>,
    return
  }
  func.func @transform_0(%arg0: i32) -> (i32, i32) {
    %c0_i32 = arith.constant 0 : i32
    %c0_i32_0 = arith.constant 0 : i32
    return %arg0, %c0_i32 : i32, i32
  }
  func.func @transform_1(%arg0: i32) -> (i32, i32) {
    %c0_i32 = arith.constant 0 : i32
    %c0_i32_0 = arith.constant 0 : i32
    %c0_i32_1 = arith.constant 0 : i32
    return %c0_i32, %c0_i32_0 : i32, i32
  }
  func.func @transform_2(%arg0: i32) -> (i32, i32) {
    %c0_i32 = arith.constant 0 : i32
    %c0_i32_0 = arith.constant 0 : i32
    %c0_i32_1 = arith.constant 0 : i32
    return %c0_i32, %c0_i32_0 : i32, i32
  }
  func.func @transform_3(%arg0: i32) -> (i32, i32) {
    %c0_i32 = arith.constant 0 : i32
    %c0_i32_0 = arith.constant 0 : i32
    %c0_i32_1 = arith.constant 0 : i32
    return %c0_i32, %c0_i32_0 : i32, i32
  }
  func.func @transform_4(%arg0: i32) -> (i32, i32) {
    %c0_i32 = arith.constant 0 : i32
    %c0_i32_0 = arith.constant 0 : i32
    %c0_i32_1 = arith.constant 0 : i32
    return %c0_i32, %c0_i32_0 : i32, i32
  }
  func.func @transform_5(%arg0: i32) -> (i32, i32) {
    %c0_i32 = arith.constant 0 : i32
    %c0_i32_0 = arith.constant 0 : i32
    %c0_i32_1 = arith.constant 0 : i32
    return %c0_i32, %c0_i32_0 : i32, i32
  }
  func.func @transform_6(%arg0: i32) -> (i32, i32) {
    %c0_i32 = arith.constant 0 : i32
    %c0_i32_0 = arith.constant 0 : i32
    %c0_i32_1 = arith.constant 0 : i32
    return %c0_i32, %c0_i32_0 : i32, i32
  }
  func.func @transform_7(%arg0: i32) -> (i32, i32) {
    %c0_i32 = arith.constant 0 : i32
    %c0_i32_0 = arith.constant 0 : i32
    return %arg0, %c0_i32 : i32, i32
  }
}

</mosaic_0001>

<bundles_post_ra>
// kernel: tpu_custom_call.1
= control target key start
LH: loop header
LB: loop body
LE: loop exit
PB: predicated region body
PF: predicated region fallthrough
CT: control target
= control target key end

     0   :  { %12 = vsyncpa [#allocation3], 0  ;;  %s722_s0 = inlined_call_operand.hbm [shape: bf16[8,16], index: 0, kind: input, shape index: {}]   ;;  %s723_s1 = inlined_call_operand.hbm [shape: bf16[16,128], index: 1, kind: input, shape index: {}]   ;;  %s724_s2 = inlined_call_operand.vmem [shape: f32[1,128], index: 2, kind: input, shape index: {}]   ;;  %s725_s3 = inlined_call_operand.hbm [shape: bf16[128,128], index: 3, kind: input, shape index: {}]   ;;  %s726_s4 = inlined_call_operand.vmem [shape: f32[1,128], index: 4, kind: input, shape index: {}]   ;;  %s727_s5 = inlined_call_operand.hbm [shape: bf16[128,128], index: 5, kind: input, shape index: {}]   ;;  %s728_s6 = inlined_call_operand.vmem [shape: f32[1,128], index: 6, kind: input, shape index: {}]   ;;  %s729_s7 = inlined_call_operand.hbm [shape: f32[8,128], index: 7, kind: output, shape index: {}]  }
   0x1   :  { %13 = vsyncpa [#allocation6], 0 }
   0x2   :  { %14 = vsyncpa [#allocation9], 0 }
   0x3   :  { %15 = vsyncpa [#allocation4], 0  ;;  %s620_s24 = smov [#allocation5]  }
   0x4   :  { %s31_s25 = sshll.u32 %s620_s24, 4  ;;  %s32_s25 = int_to_ptr.vmem [resolvable:$true] %s31_s25 }
   0x5   :  { %s520_s26 = scalar_lea.vmem %s32_s25, 128  ;;  %p525_p1 = scmp.lt.s32.totalorder %s32_s25, %s32_s25 }
   0x6   :  { %p521_p0 = scmp.ne.s32.totalorder %s32_s25, %s520_s26  ;;  %p526_p2 = scmp.lt.s32.totalorder %s520_s26, %s520_s26 }
   0x8   :  { %p527_p3 = por %p526_p2, %p525_p1 }
   0xa   :  { %p528_p4 = pnand %p527_p3, %p521_p0 }
   0xc   :  { %531 = shalt.err (!%p528_p4)
}
   0xd   :  { %s621_s27 = smov 64   ;;  %s622_s28 = smov 4  }
   0xe   :  { %37 = dma.hbm_to_vmem [thread:$0]  %s723_s1, 128, %s32_s25, [#allocation6], %s621_s27, %s621_s27, %s622_s28  }
   0xf   :  { %s623_s8 = smov [#allocation2]   ;;  %s624_s10 = smov [#allocation7]  }
  0x10   :  { %s22_s9 = sshll.u32 %s623_s8, 4  ;;  %s45_s11 = sshll.u32 %s624_s10, 4  ;;  %s23_s9 = int_to_ptr.vmem [resolvable:$true] %s22_s9  ;;  %s46_s11 = int_to_ptr.vmem [resolvable:$true] %s45_s11 }
  0x11   :  { %s540_s12 = scalar_lea.vmem %s23_s9, 64  ;;  %p545_p6 = scmp.lt.s32.totalorder %s23_s9, %s23_s9 }
  0x12   :  { %p541_p5 = scmp.ne.s32.totalorder %s23_s9, %s540_s12  ;;  %p546_p7 = scmp.lt.s32.totalorder %s540_s12, %s540_s12 }
  0x14   :  { %p547_p8 = por %p546_p7, %p545_p6 }
  0x16   :  { %p548_p9 = pnand %p547_p8, %p541_p5 }
  0x18   :  { %551 = shalt.err (!%p548_p9)
}
  0x19   :  { %25 = dma.hbm_to_vmem [thread:$0]  %s722_s0, 64, %s23_s9, [#allocation3]  }
  0x1a   :  { %s560_s15 = scalar_lea.vmem %s46_s11, 1024  ;;  %p565_p11 = scmp.lt.s32.totalorder %s46_s11, %s46_s11 }
  0x1b   :  { %p561_p10 = scmp.ne.s32.totalorder %s46_s11, %s560_s15  ;;  %p566_p12 = scmp.lt.s32.totalorder %s560_s15, %s560_s15 }
  0x1d   :  { %p567_p13 = por %p566_p12, %p565_p11 }
  0x1f   :  { %p568_p0 = pnand %p567_p13, %p561_p10 }
  0x21   :  { %571 = shalt.err (!%p568_p0)
}
  0x22   :  { %51 = dma.hbm_to_vmem [thread:$0]  %s725_s3, 1024, %s46_s11, [#allocation6], %s621_s27, %s621_s27, %s622_s28  }
  0x23   :  { %s625_s17 = smov [#allocation8]  }
  0x24   :  { %s59_s18 = sshll.u32 %s625_s17, 4  ;;  %s60_s18 = int_to_ptr.vmem [resolvable:$true] %s59_s18 }
  0x25   :  { %s580_s19 = scalar_lea.vmem %s60_s18, 1024  ;;  %p585_p2 = scmp.lt.s32.totalorder %s60_s18, %s60_s18 }
  0x26   :  { %p581_p1 = scmp.ne.s32.totalorder %s60_s18, %s580_s19  ;;  %p586_p3 = scmp.lt.s32.totalorder %s580_s19, %s580_s19 }
  0x28   :  { %p587_p4 = por %p586_p3, %p585_p2 }
  0x2a   :  { %p588_p5 = pnand %p587_p4, %p581_p1 }
  0x2c   :  { %591 = shalt.err (!%p588_p5)
}
  0x2d   :  { %65 = dma.hbm_to_vmem [thread:$0]  %s727_s5, 1024, %s60_s18, [#allocation9], %s621_s27, %s621_s27, %s622_s28  }
  0x2e   :  { %612 = dma.done.wait [#allocation3], 64  }
  0x2f   :  { %613 = vsyncadd [#allocation3], 4294967232 }
  0x30   :  { %614 = dma.done.wait [#allocation6], 1152  }
  0x31   :  { %615 = vsyncadd [#allocation6], 4294966144 }
  0x32   :  { %616 = dma.done.wait [#allocation9], 1024  }
  0x33   :  { %617 = vsyncadd [#allocation9], 4294966272  ;;  %v626_v0 = vmov 0.0   ;;  %vm627_vm0 = vmmov 0   ;;  %v491_v1 = vld [vmem:[#allocation5] sm:$0xff]   ;;  %vm97_vm1 = vcmask 130048  }
  0x34   :  { %436 = vmatprep.subr.bf16.mxu0 %v626_v0  ;;  %438 = vmatprep.mubr.msk.bf16.mxu0 %vm627_vm0, %v626_v0  ;;  %v81_v2 = vld [vmem:[#allocation2] sm:$0xf]  ;;  %v492_v3 = vld [vmem:[#allocation7 + $0x38] sm:$0xff]   ;;  %v494_v5 = vld [vmem:[#allocation7 + $0x28] sm:$0xff]  }
  0x35   :  { %442 = vmatprep.subr.bf16.mxu1 %v626_v0  ;;  %458 = vmatprep.mubr.msk.bf16.mxu1 %vm627_vm0, %v626_v0  ;;  %v493_v4 = vld [vmem:[#allocation7 + $0x30] sm:$0xff]   ;;  %v495_v6 = vld [vmem:[#allocation7 + $0x20] sm:$0xff]   ;;  %v496_v7 = vld [vmem:[#allocation7 + $0x18] sm:$0xff]  }
  0x36   :  { %437 = vmatpush3.bf16.msra.mxu0 %v491_v1  ;;  %443 = vmatpush3.bf16.msra.mxu1 %v492_v3  ;;  %v497_v8 = vld [vmem:[#allocation7 + $0x10] sm:$0xff]   ;;  %v498_v9 = vld [vmem:[#allocation7 + $0x8] sm:$0xff]   ;;  %v499_v10 = vld [vmem:[#allocation7] sm:$0xff]  }
  0x37   :  { %462 = vmatprep.subr.bf16.mxu0 %v626_v0  ;;  %444 = vmatprep.subr.bf16.mxu1 %v626_v0  ;;  %v500_v11 = vld [vmem:[#allocation8 + $0x38] sm:$0xff]   ;;  %v501_v12 = vld [vmem:[#allocation8 + $0x30] sm:$0xff]   ;;  %v502_v13 = vld [vmem:[#allocation8 + $0x28] sm:$0xff]  }
  0x38   :  { %v503_v14 = vld [vmem:[#allocation8 + $0x20] sm:$0xff]   ;;  %v504_v15 = vld [vmem:[#allocation8 + $0x18] sm:$0xff]   ;;  %v505_v16 = vld [vmem:[#allocation8 + $0x10] sm:$0xff]  }
  0x39   :  { %439 = vmatmul.mubr.msk.bf16.vlgmr.msra.gmra.mxu0 %vm97_vm1, %v81_v2  ;;  %v395_v17 = vld [vmem:[%s724_s2] ss:$0 sm:$0xff]  ;;  %v506_v25 = vld [vmem:[#allocation8 + $0x8] sm:$0xff]   ;;  %v507_v26 = vld [vmem:[#allocation8] sm:$0xff]  }
  0x3a   :  { %478 = vmatprep.mubr.msk.bf16.mxu0 %vm627_vm0, %v626_v0  ;;  %445 = vmatpush3.bf16.msra.mxu1 %v493_v4  ;;  %v398_v27 = vld [vmem:[%s726_s4] ss:$0 sm:$0xff]  ;;  %s628_s4 = smov [#allocation10]  }
  0x3b   :  { %446 = vmatprep.subr.bf16.mxu1 %v626_v0  ;;  %463 = vmatpush3.bf16.msra.mxu0 %v500_v11  ;;  %v407_v35 = vld [vmem:[%s728_s6] ss:$0 sm:$0xff]  ;;  %s384_s24 = sshll.u32 %s628_s4, 4  ;;  %s385_s24 = int_to_ptr.vmem [resolvable:$true] %s384_s24 }
  0x3c   :  { %464 = vmatprep.subr.bf16.mxu0 %v626_v0  ;;  %s592_s6 = scalar_lea.vmem %s385_s24, 128  ;;  %p597_p7 = scmp.lt.s32.totalorder %s385_s24, %s385_s24 }
  0x3d   :  { %p593_p6 = scmp.ne.s32.totalorder %s385_s24, %s592_s6  ;;  %p598_p8 = scmp.lt.s32.totalorder %s592_s6, %s592_s6 }
  0x3e   :  { %447 = vmatpush3.bf16.msra.mxu1 %v494_v5 }
  0x3f   :  { %448 = vmatprep.subr.bf16.mxu1 %v626_v0  ;;  %465 = vmatpush3.bf16.msra.mxu0 %v501_v12  ;;  %p599_p9 = por %p598_p8, %p597_p7 }
  0x40   :  { %466 = vmatprep.subr.bf16.mxu0 %v626_v0 }
  0x41   :  { %p600_p10 = pnand %p599_p9, %p593_p6 }
  0x42   :  { %449 = vmatpush3.bf16.msra.mxu1 %v495_v6 }
  0x43   :  { %450 = vmatprep.subr.bf16.mxu1 %v626_v0  ;;  %467 = vmatpush3.bf16.msra.mxu0 %v502_v13 }
  0x44   :  { %468 = vmatprep.subr.bf16.mxu0 %v626_v0 }
  0x46   :  { %451 = vmatpush3.bf16.msra.mxu1 %v496_v7 }
  0x47   :  { %452 = vmatprep.subr.bf16.mxu1 %v626_v0  ;;  %469 = vmatpush3.bf16.msra.mxu0 %v503_v14 }
  0x48   :  { %470 = vmatprep.subr.bf16.mxu0 %v626_v0 }
  0x4a   :  { %453 = vmatpush3.bf16.msra.mxu1 %v497_v8 }
  0x4b   :  { %454 = vmatprep.subr.bf16.mxu1 %v626_v0  ;;  %471 = vmatpush3.bf16.msra.mxu0 %v504_v15 }
  0x4c   :  { %472 = vmatprep.subr.bf16.mxu0 %v626_v0 }
  0x4e   :  { %455 = vmatpush3.bf16.msra.mxu1 %v498_v9 }
  0x4f   :  { %456 = vmatprep.subr.bf16.mxu1 %v626_v0  ;;  %473 = vmatpush3.bf16.msra.mxu0 %v505_v16 }
  0x50   :  { %474 = vmatprep.subr.bf16.mxu0 %v626_v0 }
  0x52   :  { %457 = vmatpush3.bf16.msra.mxu1 %v499_v10 }
  0x53   :  { %475 = vmatpush3.bf16.msra.mxu0 %v506_v25 }
  0x54   :  { %476 = vmatprep.subr.bf16.mxu0 %v626_v0 }
  0x57   :  { %477 = vmatpush3.bf16.msra.mxu0 %v507_v26 }
  0xf9   :  { %v135_v18 = vpop.f32.mrf.mxu0 }
  0xfa   :  { %v136_v19 = vadd.f32 %v395_v17, %v135_v18 }
  0xfb   :  { %v440_v20 = vpop.f32.mrf.mxu0 }
  0xfc   :  { %v141_v21 = vmax.f32 %v136_v19, 0.0 }
  0xfd   :  { %v138_v22 = vpop.f32.mrf.mxu0 }
  0xfe   :  { %v142_v23 = vpack.c.bf16 %v141_v21, %v141_v21 }
  0xff   :  { %v441_v24 = vpop.f32.mrf.mxu0 }
 0x100   :  { %459 = vmatmul.mubr.bf16.vlgmr.msra.gmra.mxu1 %v142_v23 }
 0x1c0   :  { %v248_v28 = vpop.f32.mrf.mxu1 }
 0x1c1   :  { %v249_v29 = vadd.f32 %v398_v27, %v248_v28 }
 0x1c2   :  { %v460_v30 = vpop.f32.mrf.mxu1 }
 0x1c3   :  { %v254_v31 = vmax.f32 %v249_v29, 0.0 }
 0x1c4   :  { %v251_v32 = vpop.f32.mrf.mxu1 }
 0x1c5   :  { %v255_v33 = vpack.c.bf16 %v254_v31, %v254_v31 }
 0x1c6   :  { %v461_v34 = vpop.f32.mrf.mxu1 }
 0x1c7   :  { %479 = vmatmul.mubr.bf16.vlgmr.msra.gmra.mxu0 %v255_v33 }
 0x287   :  { %v361_v36 = vpop.f32.mrf.mxu0 }
 0x288   :  { %v362_v37 = vadd.f32 %v407_v35, %v361_v36 }
 0x289   :  { %v480_v38 = vpop.f32.mrf.mxu0 }
 0x28a   :  { %367 = vmax.xlane.f32.xlu0 %v362_v37 }
 0x28b   :  { %v364_v39 = vpop.f32.mrf.mxu0 }
 0x28d   :  { %v481_v40 = vpop.f32.mrf.mxu0 }
 0x313   :  { %v368_v41 = vpop.xlane.xlu0 %367 }
 0x314   :  { %v369_v42 = vsub.f32 %v362_v37, %v368_v41 }
 0x316   :  { %v370_v43 = vmul.f32 1.442695, %v369_v42 }
 0x318   :  { %508 = vpow2.f32 %v370_v43 }
 0x325   :  { %v509_v44 = vpop.eup %508 }
 0x326   :  { %372 = vadd.xlane.f32.xlu0 %v509_v44 }
 0x3af   :  { %v373_v45 = vpop.xlane.xlu0 %372 }
 0x3b0   :  { %510 = vlog2.f32 %v373_v45 }
 0x3bd   :  { %v511_v46 = vpop.eup %510 }
 0x3be   :  { %v375_v47 = vmul.f32 0.6931472, %v511_v46 }
 0x3c0   :  { %v376_v48 = vsub.f32 %v369_v42, %v375_v47 }
 0x3c2   :  { %377 = vst [vmem:[#allocation10] sm:$0xff] %v376_v48 }
 0x3c3   :  { %603 = shalt.err (!%p600_p10)
}
 0x3c4   :  { %387 = dma.vmem_to_hbm [thread:$0]  %s385_s24, 128, %s729_s7, [#allocation4]  }
 0x3c5   :  { %618 = dma.done.wait [#allocation4], 128  }
 0x3c6   :  { %619 = vsyncadd [#allocation4], 4294967168 }
 0x3c7   :  { %391 = vsyncpa [#allocation3], 1 }
 0x3c8   :  { %392 = vsyncpa [#allocation6], 1 }
 0x3c9   :  { %393 = vsyncpa [#allocation9], 1 }
 0x3ca   :  { %394 = vsyncpa [#allocation4], 1 }

// kernel: tpu_custom_call.1
= control target key start
LH: loop header
LB: loop body
LE: loop exit
PB: predicated region body
PF: predicated region fallthrough
CT: control target
= control target key end

     0   :  { %12 = vsyncpa [#allocation3], 0  ;;  %s722_s0 = inlined_call_operand.hbm [shape: bf16[8,16], index: 0, kind: input, shape index: {}]   ;;  %s723_s1 = inlined_call_operand.hbm [shape: bf16[16,128], index: 1, kind: input, shape index: {}]   ;;  %s724_s2 = inlined_call_operand.vmem [shape: f32[1,128], index: 2, kind: input, shape index: {}]   ;;  %s725_s3 = inlined_call_operand.hbm [shape: bf16[128,128], index: 3, kind: input, shape index: {}]   ;;  %s726_s4 = inlined_call_operand.vmem [shape: f32[1,128], index: 4, kind: input, shape index: {}]   ;;  %s727_s5 = inlined_call_operand.hbm [shape: bf16[128,128], index: 5, kind: input, shape index: {}]   ;;  %s728_s6 = inlined_call_operand.vmem [shape: f32[1,128], index: 6, kind: input, shape index: {}]   ;;  %s729_s7 = inlined_call_operand.hbm [shape: f32[8,128], index: 7, kind: output, shape index: {}]  }
   0x1   :  { %13 = vsyncpa [#allocation6], 0 }
   0x2   :  { %14 = vsyncpa [#allocation9], 0 }
   0x3   :  { %15 = vsyncpa [#allocation4], 0  ;;  %s620_s24 = smov [#allocation5]  }
   0x4   :  { %s31_s25 = sshll.u32 %s620_s24, 4  ;;  %s32_s25 = int_to_ptr.vmem [resolvable:$true] %s31_s25 }
   0x5   :  { %s520_s26 = scalar_lea.vmem %s32_s25, 128  ;;  %p525_p1 = scmp.lt.s32.totalorder %s32_s25, %s32_s25 }
   0x6   :  { %p521_p0 = scmp.ne.s32.totalorder %s32_s25, %s520_s26  ;;  %p526_p2 = scmp.lt.s32.totalorder %s520_s26, %s520_s26 }
   0x8   :  { %p527_p3 = por %p526_p2, %p525_p1 }
   0xa   :  { %p528_p4 = pnand %p527_p3, %p521_p0 }
   0xc   :  { %531 = shalt.err (!%p528_p4)
}
   0xd   :  { %s621_s27 = smov 64   ;;  %s622_s28 = smov 4  }
   0xe   :  { %37 = dma.hbm_to_vmem [thread:$0]  %s723_s1, 128, %s32_s25, [#allocation6], %s621_s27, %s621_s27, %s622_s28  }
   0xf   :  { %s623_s8 = smov [#allocation2]   ;;  %s624_s10 = smov [#allocation7]  }
  0x10   :  { %s22_s9 = sshll.u32 %s623_s8, 4  ;;  %s45_s11 = sshll.u32 %s624_s10, 4  ;;  %s23_s9 = int_to_ptr.vmem [resolvable:$true] %s22_s9  ;;  %s46_s11 = int_to_ptr.vmem [resolvable:$true] %s45_s11 }
  0x11   :  { %s540_s12 = scalar_lea.vmem %s23_s9, 64  ;;  %p545_p6 = scmp.lt.s32.totalorder %s23_s9, %s23_s9 }
  0x12   :  { %p541_p5 = scmp.ne.s32.totalorder %s23_s9, %s540_s12  ;;  %p546_p7 = scmp.lt.s32.totalorder %s540_s12, %s540_s12 }
  0x14   :  { %p547_p8 = por %p546_p7, %p545_p6 }
  0x16   :  { %p548_p9 = pnand %p547_p8, %p541_p5 }
  0x18   :  { %551 = shalt.err (!%p548_p9)
}
  0x19   :  { %25 = dma.hbm_to_vmem [thread:$0]  %s722_s0, 64, %s23_s9, [#allocation3]  }
  0x1a   :  { %s560_s15 = scalar_lea.vmem %s46_s11, 1024  ;;  %p565_p11 = scmp.lt.s32.totalorder %s46_s11, %s46_s11 }
  0x1b   :  { %p561_p10 = scmp.ne.s32.totalorder %s46_s11, %s560_s15  ;;  %p566_p12 = scmp.lt.s32.totalorder %s560_s15, %s560_s15 }
  0x1d   :  { %p567_p13 = por %p566_p12, %p565_p11 }
  0x1f   :  { %p568_p0 = pnand %p567_p13, %p561_p10 }
  0x21   :  { %571 = shalt.err (!%p568_p0)
}
  0x22   :  { %51 = dma.hbm_to_vmem [thread:$0]  %s725_s3, 1024, %s46_s11, [#allocation6], %s621_s27, %s621_s27, %s622_s28  }
  0x23   :  { %s625_s17 = smov [#allocation8]  }
  0x24   :  { %s59_s18 = sshll.u32 %s625_s17, 4  ;;  %s60_s18 = int_to_ptr.vmem [resolvable:$true] %s59_s18 }
  0x25   :  { %s580_s19 = scalar_lea.vmem %s60_s18, 1024  ;;  %p585_p2 = scmp.lt.s32.totalorder %s60_s18, %s60_s18 }
  0x26   :  { %p581_p1 = scmp.ne.s32.totalorder %s60_s18, %s580_s19  ;;  %p586_p3 = scmp.lt.s32.totalorder %s580_s19, %s580_s19 }
  0x28   :  { %p587_p4 = por %p586_p3, %p585_p2 }
  0x2a   :  { %p588_p5 = pnand %p587_p4, %p581_p1 }
  0x2c   :  { %591 = shalt.err (!%p588_p5)
}
  0x2d   :  { %65 = dma.hbm_to_vmem [thread:$0]  %s727_s5, 1024, %s60_s18, [#allocation9], %s621_s27, %s621_s27, %s622_s28  }
  0x2e   :  { %612 = dma.done.wait [#allocation3], 64  }
  0x2f   :  { %613 = vsyncadd [#allocation3], 4294967232 }
  0x30   :  { %614 = dma.done.wait [#allocation6], 1152  }
  0x31   :  { %615 = vsyncadd [#allocation6], 4294966144 }
  0x32   :  { %616 = dma.done.wait [#allocation9], 1024  }
  0x33   :  { %617 = vsyncadd [#allocation9], 4294966272  ;;  %v626_v0 = vmov 0.0   ;;  %vm627_vm0 = vmmov 0   ;;  %v491_v1 = vld [vmem:[#allocation5] sm:$0xff]   ;;  %vm97_vm1 = vcmask 130048  }
  0x34   :  { %436 = vmatprep.subr.bf16.mxu0 %v626_v0  ;;  %438 = vmatprep.mubr.msk.bf16.mxu0 %vm627_vm0, %v626_v0  ;;  %v81_v2 = vld [vmem:[#allocation2] sm:$0xf]  ;;  %v492_v3 = vld [vmem:[#allocation7 + $0x38] sm:$0xff]   ;;  %v494_v5 = vld [vmem:[#allocation7 + $0x28] sm:$0xff]  }
  0x35   :  { %442 = vmatprep.subr.bf16.mxu1 %v626_v0  ;;  %458 = vmatprep.mubr.msk.bf16.mxu1 %vm627_vm0, %v626_v0  ;;  %v493_v4 = vld [vmem:[#allocation7 + $0x30] sm:$0xff]   ;;  %v495_v6 = vld [vmem:[#allocation7 + $0x20] sm:$0xff]   ;;  %v496_v7 = vld [vmem:[#allocation7 + $0x18] sm:$0xff]  }
  0x36   :  { %437 = vmatpush3.bf16.msra.mxu0 %v491_v1  ;;  %443 = vmatpush3.bf16.msra.mxu1 %v492_v3  ;;  %v497_v8 = vld [vmem:[#allocation7 + $0x10] sm:$0xff]   ;;  %v498_v9 = vld [vmem:[#allocation7 + $0x8] sm:$0xff]   ;;  %v499_v10 = vld [vmem:[#allocation7] sm:$0xff]  }
  0x37   :  { %462 = vmatprep.subr.bf16.mxu0 %v626_v0  ;;  %444 = vmatprep.subr.bf16.mxu1 %v626_v0  ;;  %v500_v11 = vld [vmem:[#allocation8 + $0x38] sm:$0xff]   ;;  %v501_v12 = vld [vmem:[#allocation8 + $0x30] sm:$0xff]   ;;  %v502_v13 = vld [vmem:[#allocation8 + $0x28] sm:$0xff]  }
  0x38   :  { %v503_v14 = vld [vmem:[#allocation8 + $0x20] sm:$0xff]   ;;  %v504_v15 = vld [vmem:[#allocation8 + $0x18] sm:$0xff]   ;;  %v505_v16 = vld [vmem:[#allocation8 + $0x10] sm:$0xff]  }
  0x39   :  { %439 = vmatmul.mubr.msk.bf16.vlgmr.msra.gmra.mxu0 %vm97_vm1, %v81_v2  ;;  %v395_v17 = vld [vmem:[%s724_s2] ss:$0 sm:$0xff]  ;;  %v506_v25 = vld [vmem:[#allocation8 + $0x8] sm:$0xff]   ;;  %v507_v26 = vld [vmem:[#allocation8] sm:$0xff]  }
  0x3a   :  { %478 = vmatprep.mubr.msk.bf16.mxu0 %vm627_vm0, %v626_v0  ;;  %445 = vmatpush3.bf16.msra.mxu1 %v493_v4  ;;  %v398_v27 = vld [vmem:[%s726_s4] ss:$0 sm:$0xff]  ;;  %s628_s4 = smov [#allocation10]  }
  0x3b   :  { %446 = vmatprep.subr.bf16.mxu1 %v626_v0  ;;  %463 = vmatpush3.bf16.msra.mxu0 %v500_v11  ;;  %v407_v35 = vld [vmem:[%s728_s6] ss:$0 sm:$0xff]  ;;  %s384_s24 = sshll.u32 %s628_s4, 4  ;;  %s385_s24 = int_to_ptr.vmem [resolvable:$true] %s384_s24 }
  0x3c   :  { %464 = vmatprep.subr.bf16.mxu0 %v626_v0  ;;  %s592_s6 = scalar_lea.vmem %s385_s24, 128  ;;  %p597_p7 = scmp.lt.s32.totalorder %s385_s24, %s385_s24 }
  0x3d   :  { %p593_p6 = scmp.ne.s32.totalorder %s385_s24, %s592_s6  ;;  %p598_p8 = scmp.lt.s32.totalorder %s592_s6, %s592_s6 }
  0x3e   :  { %447 = vmatpush3.bf16.msra.mxu1 %v494_v5 }
  0x3f   :  { %448 = vmatprep.subr.bf16.mxu1 %v626_v0  ;;  %465 = vmatpush3.bf16.msra.mxu0 %v501_v12  ;;  %p599_p9 = por %p598_p8, %p597_p7 }
  0x40   :  { %466 = vmatprep.subr.bf16.mxu0 %v626_v0 }
  0x41   :  { %p600_p10 = pnand %p599_p9, %p593_p6 }
  0x42   :  { %449 = vmatpush3.bf16.msra.mxu1 %v495_v6 }
  0x43   :  { %450 = vmatprep.subr.bf16.mxu1 %v626_v0  ;;  %467 = vmatpush3.bf16.msra.mxu0 %v502_v13 }
  0x44   :  { %468 = vmatprep.subr.bf16.mxu0 %v626_v0 }
  0x46   :  { %451 = vmatpush3.bf16.msra.mxu1 %v496_v7 }
  0x47   :  { %452 = vmatprep.subr.bf16.mxu1 %v626_v0  ;;  %469 = vmatpush3.bf16.msra.mxu0 %v503_v14 }
  0x48   :  { %470 = vmatprep.subr.bf16.mxu0 %v626_v0 }
  0x4a   :  { %453 = vmatpush3.bf16.msra.mxu1 %v497_v8 }
  0x4b   :  { %454 = vmatprep.subr.bf16.mxu1 %v626_v0  ;;  %471 = vmatpush3.bf16.msra.mxu0 %v504_v15 }
  0x4c   :  { %472 = vmatprep.subr.bf16.mxu0 %v626_v0 }
  0x4e   :  { %455 = vmatpush3.bf16.msra.mxu1 %v498_v9 }
  0x4f   :  { %456 = vmatprep.subr.bf16.mxu1 %v626_v0  ;;  %473 = vmatpush3.bf16.msra.mxu0 %v505_v16 }
  0x50   :  { %474 = vmatprep.subr.bf16.mxu0 %v626_v0 }
  0x52   :  { %457 = vmatpush3.bf16.msra.mxu1 %v499_v10 }
  0x53   :  { %475 = vmatpush3.bf16.msra.mxu0 %v506_v25 }
  0x54   :  { %476 = vmatprep.subr.bf16.mxu0 %v626_v0 }
  0x57   :  { %477 = vmatpush3.bf16.msra.mxu0 %v507_v26 }
  0xf9   :  { %v135_v18 = vpop.f32.mrf.mxu0 }
  0xfa   :  { %v136_v19 = vadd.f32 %v395_v17, %v135_v18 }
  0xfb   :  { %v440_v20 = vpop.f32.mrf.mxu0 }
  0xfc   :  { %v141_v21 = vmax.f32 %v136_v19, 0.0 }
  0xfd   :  { %v138_v22 = vpop.f32.mrf.mxu0 }
  0xfe   :  { %v142_v23 = vpack.c.bf16 %v141_v21, %v141_v21 }
  0xff   :  { %v441_v24 = vpop.f32.mrf.mxu0 }
 0x100   :  { %459 = vmatmul.mubr.bf16.vlgmr.msra.gmra.mxu1 %v142_v23 }
 0x1c0   :  { %v248_v28 = vpop.f32.mrf.mxu1 }
 0x1c1   :  { %v249_v29 = vadd.f32 %v398_v27, %v248_v28 }
 0x1c2   :  { %v460_v30 = vpop.f32.mrf.mxu1 }
 0x1c3   :  { %v254_v31 = vmax.f32 %v249_v29, 0.0 }
 0x1c4   :  { %v251_v32 = vpop.f32.mrf.mxu1 }
 0x1c5   :  { %v255_v33 = vpack.c.bf16 %v254_v31, %v254_v31 }
 0x1c6   :  { %v461_v34 = vpop.f32.mrf.mxu1 }
 0x1c7   :  { %479 = vmatmul.mubr.bf16.vlgmr.msra.gmra.mxu0 %v255_v33 }
 0x287   :  { %v361_v36 = vpop.f32.mrf.mxu0 }
 0x288   :  { %v362_v37 = vadd.f32 %v407_v35, %v361_v36 }
 0x289   :  { %v480_v38 = vpop.f32.mrf.mxu0 }
 0x28a   :  { %367 = vmax.xlane.f32.xlu0 %v362_v37 }
 0x28b   :  { %v364_v39 = vpop.f32.mrf.mxu0 }
 0x28d   :  { %v481_v40 = vpop.f32.mrf.mxu0 }
 0x313   :  { %v368_v41 = vpop.xlane.xlu0 %367 }
 0x314   :  { %v369_v42 = vsub.f32 %v362_v37, %v368_v41 }
 0x316   :  { %v370_v43 = vmul.f32 1.442695, %v369_v42 }
 0x318   :  { %508 = vpow2.f32 %v370_v43 }
 0x325   :  { %v509_v44 = vpop.eup %508 }
 0x326   :  { %372 = vadd.xlane.f32.xlu0 %v509_v44 }
 0x3af   :  { %v373_v45 = vpop.xlane.xlu0 %372 }
 0x3b0   :  { %510 = vlog2.f32 %v373_v45 }
 0x3bd   :  { %v511_v46 = vpop.eup %510 }
 0x3be   :  { %v375_v47 = vmul.f32 0.6931472, %v511_v46 }
 0x3c0   :  { %v376_v48 = vsub.f32 %v369_v42, %v375_v47 }
 0x3c2   :  { %377 = vst [vmem:[#allocation10] sm:$0xff] %v376_v48 }
 0x3c3   :  { %603 = shalt.err (!%p600_p10)
}
 0x3c4   :  { %387 = dma.vmem_to_hbm [thread:$0]  %s385_s24, 128, %s729_s7, [#allocation4]  }
 0x3c5   :  { %618 = dma.done.wait [#allocation4], 128  }
 0x3c6   :  { %619 = vsyncadd [#allocation4], 4294967168 }
 0x3c7   :  { %391 = vsyncpa [#allocation3], 1 }
 0x3c8   :  { %392 = vsyncpa [#allocation6], 1 }
 0x3c9   :  { %393 = vsyncpa [#allocation9], 1 }
 0x3ca   :  { %394 = vsyncpa [#allocation4], 1 }

</bundles_post_ra>
